<compile_context>
chip_gen: v7x
topology: tpu7x:2x2x1
jax: 0.10.0
libtpu: 0.0.40
codegen_flags: <defaults>
</compile_context>

<pallas_src>
import jax
import jax.numpy as jnp
from jax.experimental import pallas as pl
from jax.experimental.pallas import tpu as pltpu

_LANES = 128
_SUBLANES = 8
_TILE_ELEMS = _LANES * _SUBLANES  # one full (8,128) f32 tile = 1024 rows of N


def _round_up(x, m):
    return (x + m - 1) // m * m


def _random_net_kernel(theta_ref, u_ref, baseline_ref, action_ref):
    """One lane-dense block of the RandomNet forward.

    theta_ref    : (1, A)        f32  -- parameter row
    u_ref        : (R_blk, 128)  f32  -- one uniform per row, lane-dense
    baseline_ref : (R_blk, 128)  f32  -- per-row logits sums, lane-dense
    action_ref   : (R_blk, 128)  i32  -- sampled actions, lane-dense
    """
    A = theta_ref.shape[-1]

    # baseline = (theta * 0).sum() broadcast over all rows.  Keeping the
    # theta*0 form preserves NaN/Inf propagation exactly like the module.
    zeros_row = theta_ref[...] * jnp.float32(0.0)                  # (1, A)
    row_sum = jnp.sum(zeros_row, axis=-1, keepdims=True)           # (1, 1)
    baseline_ref[...] = jnp.broadcast_to(row_sum, baseline_ref.shape)

    # torch.multinomial(softmax(zeros), 1) is uniform over the A actions, so a
    # single uniform per row suffices: action = min(floor(u * A), A - 1).
    u = u_ref[...]
    action = jnp.floor(u * jnp.float32(A)).astype(jnp.int32)
    action_ref[...] = jnp.minimum(action, A - 1)


def random_net_forward(theta, observation_shape, key, core_state=()):
    """JAX/Pallas equivalent of RandomNet.forward.

    theta: (num_actions,) parameter (zeros-initialized, as in __init__).
    observation_shape: shape of inputs['observation']; only T, B are used.
    key: jax PRNG key for the categorical sample.
    """
    T, B = int(observation_shape[0]), int(observation_shape[1])
    A = int(theta.shape[-1])
    N = T * B

    # Lane-dense layout: the N rows are laid out as (R, 128) f32/i32 slabs made
    # of whole (8,128) tiles.  Small N -> a single block (G=1, best for the
    # single-core v5e/v6e serial grid); large N -> G=2 "parallel" blocks so
    # v7x's two TensorCores split the work.  VMEM is never the constraint at
    # these sizes.
    if N <= _TILE_ELEMS:
        N_pad = _TILE_ELEMS
        G = 1
    else:
        N_pad = _round_up(N, 2 * _TILE_ELEMS)
        G = 2
    R = N_pad // _LANES        # total 128-lane rows
    R_blk = R // G             # rows per block (multiple of 8)

    theta2 = theta.reshape(1, A).astype(jnp.float32)

    # One uniform per row, generated tiling-independently (flat (N,) array) so
    # the sampled actions are reproducible across tile configurations.
    # TODO(synk): torch.multinomial's exact RNG stream is not reproduced; the
    # uniforms come from jax.random (same uniform-over-actions distribution).
    u = jax.random.uniform(key, (N,), dtype=jnp.float32)
    u_lane = jnp.pad(u, (0, N_pad - N)).reshape(R, _LANES)

    baseline_lane, action_lane = pl.pallas_call(
        _random_net_kernel,
        grid=(G,),
        out_shape=(
            jax.ShapeDtypeStruct((R, _LANES), jnp.float32),   # baseline
            jax.ShapeDtypeStruct((R, _LANES), jnp.int32),     # action
        ),
        in_specs=[
            pl.BlockSpec((1, A), lambda i: (0, 0)),           # theta row
            pl.BlockSpec((R_blk, _LANES), lambda i: (i, 0)),  # uniforms
        ],
        out_specs=(
            pl.BlockSpec((R_blk, _LANES), lambda i: (i, 0)),  # baseline
            pl.BlockSpec((R_blk, _LANES), lambda i: (i, 0)),  # action
        ),
        compiler_params=pltpu.CompilerParams(
            dimension_semantics=("parallel",)),
    )(theta2, u_lane)

    # policy_logits is N*A identical values; expressing it as an XLA broadcast
    # (instead of a masked 6-of-128-lane kernel writeback) removes the
    # dominant store/DMA cost while keeping theta*0 NaN/Inf semantics.
    policy_logits = jnp.broadcast_to(
        (theta * jnp.float32(0.0)).astype(jnp.float32)[None, None, :], (T, B, A))

    out = dict(
        policy_logits=policy_logits,
        # .sum(dim=1).view(-1, B) over T*B rows == (T, B)
        baseline=baseline_lane.reshape(-1)[:N].reshape(T, B),
        action=action_lane.reshape(-1)[:N].reshape(T, B),
    )
    return out, core_state


if __name__ == "__main__":
    key = jax.random.PRNGKey(0)
    obs_key, sample_key = jax.random.split(key)

    # Small shapes consistent with the module: T=2 timesteps, B=2 batch,
    # observation frames of (C=3, H=16, W=16), num_actions=6.
    T, B, C, H, W = 2, 2, 3, 16, 16
    num_actions = 6

    observation = jax.random.normal(obs_key, (T, B, C, H, W), dtype=jnp.float32)

    # Parameter init exactly as in __init__: theta = zeros(num_actions).
    theta = jnp.zeros((num_actions,), dtype=jnp.float32)

    out, core_state = random_net_forward(theta, observation.shape, sample_key)
    jax.block_until_ready(out)

    assert out["policy_logits"].shape == (T, B, num_actions)
    assert out["baseline"].shape == (T, B)
    assert out["action"].shape == (T, B)
    assert bool(jnp.all(out["policy_logits"] == 0.0))
    assert bool(jnp.all(out["baseline"] == 0.0))
    assert bool(jnp.all((out["action"] >= 0) & (out["action"] < num_actions)))
    assert core_state == ()

    print("KERNEL_OK")
</pallas_src>

<mosaic_0001>
module attributes {stable_mosaic.version = 11 : i64} {
  func.func @_random_net_kernel(%arg0: i32, %arg1: memref<1x6xf32, #tpu.memory_space<vmem>>, %arg2: memref<8x128xf32, #tpu.memory_space<vmem>>, %arg3: memref<8x128xf32, #tpu.memory_space<vmem>>, %arg4: memref<8x128xi32, #tpu.memory_space<vmem>>) attributes {dimension_semantics = [#tpu.dimension_semantics<parallel>], iteration_bounds = array<i64: 1>, scalar_prefetch = 0 : i64, scratch_operands = 0 : i64, tpu.core_type = #tpu.core_type<tc>, window_params = [{pipeline_mode = #tpu.pipeline_mode<synchronous>, transform_indices = @transform_0, window_bounds = array<i64: 1, 6>}, {transform_indices = @transform_1, window_bounds = array<i64: 8, 128>}, {transform_indices = @transform_2, window_bounds = array<i64: 8, 128>}, {transform_indices = @transform_3, window_bounds = array<i64: 8, 128>}]} {
    %c0 = arith.constant 0 : index
    %c0_0 = arith.constant 0 : index
    %0 = vector.load %arg1[%c0, %c0_0] : memref<1x6xf32, #tpu.memory_space<vmem>>, vector<1x6xf32>
    %cst = arith.constant 0.000000e+00 : f32
    %1 = vector.broadcast %cst : f32 to vector<1x6xf32>
    %2 = arith.mulf %0, %1 : vector<1x6xf32>
    %cst_1 = arith.constant dense<0.000000e+00> : vector<1xf32>
    %3 = vector.multi_reduction <add>, %2, %cst_1 [1] : vector<1x6xf32> to vector<1xf32>
    %4 = vector.shape_cast %3 : vector<1xf32> to vector<1x1xf32>
    %5 = vector.shape_cast %4 : vector<1x1xf32> to vector<1x1xf32>
    %6 = vector.broadcast %5 : vector<1x1xf32> to vector<8x128xf32>
    %c0_2 = arith.constant 0 : index
    %c0_3 = arith.constant 0 : index
    %7 = vector.load %arg3[%c0_2, %c0_3] : memref<8x128xf32, #tpu.memory_space<vmem>>, vector<8x128xf32>
    tpu.vector_store %arg3[%c0_2, %c0_3], %6 {strides = array<i32>} : memref<8x128xf32, #tpu.memory_space<vmem>>, vector<8x128xf32>,
    %c0_4 = arith.constant 0 : index
    %c0_5 = arith.constant 0 : index
    %8 = vector.load %arg2[%c0_4, %c0_5] : memref<8x128xf32, #tpu.memory_space<vmem>>, vector<8x128xf32>
    %cst_6 = arith.constant 6.000000e+00 : f32
    %9 = vector.broadcast %cst_6 : f32 to vector<8x128xf32>
    %10 = arith.mulf %8, %9 : vector<8x128xf32>
    %11 = math.floor %10 : vector<8x128xf32>
    %12 = arith.fptosi %11 : vector<8x128xf32> to vector<8x128xi32>
    %c5_i32 = arith.constant 5 : i32
    %13 = vector.broadcast %c5_i32 : i32 to vector<8x128xi32>
    %14 = arith.minsi %12, %13 : vector<8x128xi32>
    %c0_7 = arith.constant 0 : index
    %c0_8 = arith.constant 0 : index
    %15 = vector.load %arg4[%c0_7, %c0_8] : memref<8x128xi32, #tpu.memory_space<vmem>>, vector<8x128xi32>
    tpu.vector_store %arg4[%c0_7, %c0_8], %14 {strides = array<i32>} : memref<8x128xi32, #tpu.memory_space<vmem>>, vector<8x128xi32>,
    return
  }
  func.func @transform_0(%arg0: i32) -> (i32, i32) {
    %c0_i32 = arith.constant 0 : i32
    %c0_i32_0 = arith.constant 0 : i32
    %c0_i32_1 = arith.constant 0 : i32
    return %c0_i32, %c0_i32_0 : i32, i32
  }
  func.func @transform_1(%arg0: i32) -> (i32, i32) {
    %c0_i32 = arith.constant 0 : i32
    %c0_i32_0 = arith.constant 0 : i32
    return %arg0, %c0_i32 : i32, i32
  }
  func.func @transform_2(%arg0: i32) -> (i32, i32) {
    %c0_i32 = arith.constant 0 : i32
    %c0_i32_0 = arith.constant 0 : i32
    return %arg0, %c0_i32 : i32, i32
  }
  func.func @transform_3(%arg0: i32) -> (i32, i32) {
    %c0_i32 = arith.constant 0 : i32
    %c0_i32_0 = arith.constant 0 : i32
    return %arg0, %c0_i32 : i32, i32
  }
}

</mosaic_0001>

<bundles_post_ra>
// kernel: tpu_custom_call.1
= control target key start
LH: loop header
LB: loop body
LE: loop exit
PB: predicated region body
PF: predicated region fallthrough
CT: control target
= control target key end

     0   :  { %9 = vsyncpa [#allocation3], 0  ;;  %s261_s0 = inlined_call_operand.hbm [shape: f32[1,6], index: 0, kind: input, shape index: {}]   ;;  %s262_s1 = inlined_call_operand.hbm [shape: f32[8,128], index: 1, kind: input, shape index: {}]   ;;  %s263_s2 = inlined_call_operand.hbm [shape: f32[8,128], index: 2, kind: output, shape index: {0}]   ;;  %s264_s3 = inlined_call_operand.hbm [shape: s32[8,128], index: 3, kind: output, shape index: {1}]  }
   0x1   :  { %10 = vsyncpa [#allocation6], 0 }
   0x2   :  { %11 = vsyncpa [#allocation4], 0 }
   0x3   :  { %12 = vsyncpa [#allocation9], 0  ;;  %s189_s12 = smov [#allocation2]   ;;  %s190_s14 = smov [#allocation5]  }
   0x4   :  { %s19_s13 = sshll.u32 %s189_s12, 4  ;;  %s29_s15 = sshll.u32 %s190_s14, 4  ;;  %s20_s13 = int_to_ptr.vmem [resolvable:$true] %s19_s13  ;;  %s30_s15 = int_to_ptr.vmem [resolvable:$true] %s29_s15 }
   0x5   :  { %s93_s18 = scalar_lea.hbm %s261_s0, 16 }
   0x6   :  { %p94_p0 = scmp.ne.s32.totalorder %s261_s0, %s93_s18  ;;  %p97_p1 = scmp.lt.u32.totalorder %s93_s18, %s261_s0 }
   0x8   :  { %p99_p2 = pnand %p97_p1, %p94_p0 }
   0xa   :  { %102 = shalt.err (!%p99_p2)
}
   0xb   :  { %s103_s23 = scalar_lea.vmem %s20_s13, 16  ;;  %s107_s24 = scalar_lea.vmem %s20_s13, 32 }
   0xc   :  { %p104_p3 = scmp.ne.s32.totalorder %s20_s13, %s103_s23  ;;  %p108_p4 = scmp.lt.s32.totalorder %s20_s13, %s20_s13 }
   0xd   :  { %p109_p5 = scmp.lt.s32.totalorder %s107_s24, %s103_s23 }
   0xf   :  { %p110_p6 = por %p109_p5, %p108_p4 }
  0x11   :  { %p111_p7 = pnand %p110_p6, %p104_p3 }
  0x13   :  { %114 = shalt.err (!%p111_p7)
}
  0x14   :  { %22 = dma.hbm_to_vmem [thread:$0]  %s261_s0, 16, %s20_s13, [#allocation3]  }
  0x15   :  { %s115_s29 = scalar_lea.hbm %s262_s1, 128 }
  0x16   :  { %p116_p8 = scmp.ne.s32.totalorder %s262_s1, %s115_s29  ;;  %p119_p9 = scmp.lt.u32.totalorder %s115_s29, %s262_s1 }
  0x18   :  { %p121_p10 = pnand %p119_p9, %p116_p8 }
  0x1a   :  { %124 = shalt.err (!%p121_p10)
}
  0x1b   :  { %s125_s7 = scalar_lea.vmem %s30_s15, 128  ;;  %p130_p12 = scmp.lt.s32.totalorder %s30_s15, %s30_s15 }
  0x1c   :  { %p126_p11 = scmp.ne.s32.totalorder %s30_s15, %s125_s7  ;;  %p131_p13 = scmp.lt.s32.totalorder %s125_s7, %s125_s7 }
  0x1e   :  { %p132_p0 = por %p131_p13, %p130_p12 }
  0x20   :  { %p133_p1 = pnand %p132_p0, %p126_p11 }
  0x22   :  { %136 = shalt.err (!%p133_p1)
}
  0x23   :  { %32 = dma.hbm_to_vmem [thread:$0]  %s262_s1, 128, %s30_s15, [#allocation6]  }
  0x24   :  { %181 = dma.done.wait [#allocation3], 16  }
  0x25   :  { %182 = vsyncadd [#allocation3], 4294967280 }
  0x26   :  { %183 = dma.done.wait [#allocation6], 128  }
  0x27   :  { %184 = vsyncadd [#allocation6], 4294967168  ;;  %v39_v0 = vld [vmem:[#allocation2] sm:$0x1]  ;;  %vm41_vm0 = vcmask 40960   ;;  %v50_v3 = vld [vmem:[#allocation5] sm:$0xff] }
  0x28   :  { %v40_v1 = vmul.f32 0.0, %v39_v0  ;;  %v51_v4 = vmul.f32 6.0, %v50_v3  ;;  %s191_s9 = smov [#allocation8]  }
  0x29   :  { %s73_s10 = sshll.u32 %s191_s9, 4  ;;  %s74_s10 = int_to_ptr.vmem [resolvable:$true] %s73_s10 }
  0x2a   :  { %v42_v2 = vsel %vm41_vm0, %v40_v1, 0.0  ;;  %v52_v5 = vfloor.f32 %v51_v4  ;;  %s137_s1 = scalar_lea.vmem %s74_s10, 128  ;;  %p142_p3 = scmp.lt.s32.totalorder %s74_s10, %s74_s10 }
  0x2b   :  { %43 = vadd.xlane.f32.xlu0 %v42_v2  ;;  %p138_p2 = scmp.ne.s32.totalorder %s74_s10, %s137_s1  ;;  %p143_p4 = scmp.lt.s32.totalorder %s137_s1, %s137_s1 }
  0x2c   :  { %v87_v6 = vtrunc.f32 %v52_v5 }
  0x2d   :  { %p144_p5 = por %p143_p4, %p142_p3 }
  0x2e   :  { %v88_v7 = vcvt.f32.s32 %v87_v6 }
  0x2f   :  { %p145_p6 = pnand %p144_p5, %p138_p2 }
  0x30   :  { %vm54_vm1 = vcmp.lt.s32.totalorder %v88_v7, 5 }
  0x31   :  { %v55_v8 = vsel %vm54_vm1, %v88_v7, 5 }
  0x32   :  { %56 = vst [vmem:[#allocation8] sm:$0xff] %v55_v8 }
  0x33   :  { %148 = shalt.err (!%p145_p6)
}
  0x34   :  { %s149_s13 = scalar_lea.hbm %s264_s3, 128 }
  0x35   :  { %p150_p7 = scmp.ne.s32.totalorder %s264_s3, %s149_s13  ;;  %p153_p8 = scmp.lt.u32.totalorder %s149_s13, %s264_s3 }
  0x37   :  { %p155_p9 = pnand %p153_p8, %p150_p7 }
  0x39   :  { %158 = shalt.err (!%p155_p9)
}
  0x3a   :  { %76 = dma.vmem_to_hbm [thread:$0]  %s74_s10, 128, %s264_s3, [#allocation9]   ;;  %v45_v9 = vlaneseq }
  0x3b   :  { %s192_s20 = smov [#allocation7]  }
  0x3c   :  { %v46_v10 = vshrl.u32 %v45_v9, 7  ;;  %s63_s21 = sshll.u32 %s192_s20, 4  ;;  %s64_s21 = int_to_ptr.vmem [resolvable:$true] %s63_s21 }
  0x3d   :  { %s159_s22 = scalar_lea.vmem %s64_s21, 128  ;;  %p164_p11 = scmp.lt.s32.totalorder %s64_s21, %s64_s21 }
  0x3e   :  { %v47_v11 = vsub.s32 0, %v46_v10  ;;  %p160_p10 = scmp.ne.s32.totalorder %s64_s21, %s159_s22  ;;  %p165_p12 = scmp.lt.s32.totalorder %s159_s22, %s159_s22 }
  0x40   :  { %p166_p13 = por %p165_p12, %p164_p11 }
  0x42   :  { %p167_p0 = pnand %p166_p13, %p160_p10 }
  0xb8   :  { %v44_v12 = vpop.xlane.xlu0 %43 }
  0xb9   :  { %v48_v13 = vrot.slane %v44_v12, %v47_v11 }
  0xbb   :  { %49 = vst [vmem:[#allocation7] sm:$0xff] %v48_v13 }
  0xbc   :  { %170 = shalt.err (!%p167_p0)
}
  0xbd   :  { %s171_s3 = scalar_lea.hbm %s263_s2, 128 }
  0xbe   :  { %p172_p1 = scmp.ne.s32.totalorder %s263_s2, %s171_s3  ;;  %p175_p2 = scmp.lt.u32.totalorder %s171_s3, %s263_s2 }
  0xc0   :  { %p177_p3 = pnand %p175_p2, %p172_p1 }
  0xc2   :  { %180 = shalt.err (!%p177_p3)
}
  0xc3   :  { %66 = dma.vmem_to_hbm [thread:$0]  %s64_s21, 128, %s263_s2, [#allocation4]  }
  0xc4   :  { %185 = dma.done.wait [#allocation4], 128  }
  0xc5   :  { %186 = vsyncadd [#allocation4], 4294967168 }
  0xc6   :  { %187 = dma.done.wait [#allocation9], 128  }
  0xc7   :  { %188 = vsyncadd [#allocation9], 4294967168 }
  0xc8   :  { %83 = vsyncpa [#allocation3], 1 }
  0xc9   :  { %84 = vsyncpa [#allocation6], 1 }
  0xca   :  { %85 = vsyncpa [#allocation4], 1 }
  0xcb   :  { %86 = vsyncpa [#allocation9], 1 }

</bundles_post_ra>
